<compile_context>
chip_gen: v6e
topology: v6e:2x2x1
jax: 0.10.0
libtpu: 0.0.40
codegen_flags: <defaults>
</compile_context>

<pallas_src>
import jax
import jax.numpy as jnp
from jax.experimental import pallas as pl
from jax.experimental.pallas import tpu as pltpu

EPS = 1e-5
LANE = 128


def features_only_kernel(x_ref, w1_ref, aux_ref, o_ref):
    # x_ref:   [Bt, F]   input features (raw; BN already folded into W1'/b1')
    # w1_ref:  [F,  Hp]  BN-folded, lane-padded first Linear weight (in x out)
    # aux_ref: [8,  Hp]  row 0 = b1', row 1 = w2 row (padded), row 2 lane 0 = b2
    x = x_ref[...]

    # Linear1 (BN folded in) + bias + ReLU.  Dropout = identity in eval mode.
    h = jnp.dot(x, w1_ref[...], preferred_element_type=jnp.float32)
    h = jnp.maximum(h + aux_ref[0:1, :], 0.0)                      # [Bt, Hp]

    # Linear2 with out_features == 1: VPU mul + lane reduce (skip the N=1 MXU matmul).
    z = jnp.sum(h * aux_ref[1:2, :], axis=-1, keepdims=True)       # [Bt, 1]
    z = z + aux_ref[2:3, 0:1]                                      # + b2

    # Sigmoid via tanh (EUP slot, no divide, no exp overflow).
    o_ref[...] = 0.5 * (jnp.tanh(0.5 * z) + 1.0)


def fold_and_pack_params(mean, var, w1, b1, w2, b2):
    """Fold eval-mode BatchNorm into Linear1 and pack small operands.

    mean, var : [F]      frozen running stats
    w1        : [F, H]   Linear1 weight, stored transposed (in x out)
    b1        : [H]
    w2        : [H, 1]   Linear2 weight, stored transposed (in x out)
    b2        : [1]
    Returns (w1p [F, Hp], aux [8, Hp]) with Hp = H rounded up to 128 lanes.
    """
    F, H = w1.shape
    inv_std = 1.0 / jnp.sqrt(var + EPS)                    # [F]
    w1f = w1 * inv_std[:, None]                            # [F, H]
    b1f = b1 - (mean * inv_std) @ w1                       # [H]

    Hp = max(LANE, ((H + LANE - 1) // LANE) * LANE)
    w1p = jnp.zeros((F, Hp), jnp.float32).at[:, :H].set(w1f)
    aux = jnp.zeros((8, Hp), jnp.float32)
    aux = aux.at[0, :H].set(b1f)                           # b1'
    aux = aux.at[1, :H].set(w2.reshape(-1))                # w2 as a row
    aux = aux.at[2, 0].set(jnp.reshape(b2, ()))            # b2 scalar
    return w1p, aux


def features_only_forward(x, w1p, aux, *, block_b=None):
    B, F = x.shape
    Hp = w1p.shape[1]

    # Batch-parallel grid: single step for small B, 256-row blocks for large B
    # (engages both TensorCores per chip on v7x via "parallel" semantics).
    if block_b is None:
        block_b = B if B <= 256 else 256
    assert B % block_b == 0, "batch must be a multiple of the batch block"
    grid = (B // block_b,)

    return pl.pallas_call(
        features_only_kernel,
        out_shape=jax.ShapeDtypeStruct((B, 1), jnp.float32),
        grid=grid,
        in_specs=[
            pl.BlockSpec((block_b, F), lambda i: (i, 0)),   # x
            pl.BlockSpec((F, Hp), lambda i: (0, 0)),        # W1' (BN folded, padded)
            pl.BlockSpec((8, Hp), lambda i: (0, 0)),        # packed b1' / w2 / b2
        ],
        out_specs=pl.BlockSpec((block_b, 1), lambda i: (i, 0)),
        compiler_params=pltpu.CompilerParams(
            dimension_semantics=("parallel",)),
    )(x, w1p, aux)


if __name__ == "__main__":
    key = jax.random.PRNGKey(0)
    kx, kp = jax.random.split(key)

    # layer_sizes exactly as the PyTorch __init__ computes them: 156 -> 78 -> 1
    input_size, output_size, dense_layers = 156, 1, 3
    layer_sizes = [
        int(input_size - i * (input_size - output_size) / (dense_layers - 1))
        for i in range(dense_layers)
    ]
    F, H, O = layer_sizes

    # Deterministic synthetic parameters (PyTorch-Linear-like uniform init scale)
    k = jax.random.split(kp, 6)
    w1 = jax.random.uniform(k[0], (F, H), jnp.float32, -1.0, 1.0) / jnp.sqrt(F)
    b1 = jax.random.uniform(k[1], (H,), jnp.float32, -1.0, 1.0) / jnp.sqrt(F)
    w2 = jax.random.uniform(k[2], (H, O), jnp.float32, -1.0, 1.0) / jnp.sqrt(H)
    b2 = jax.random.uniform(k[3], (O,), jnp.float32, -1.0, 1.0) / jnp.sqrt(H)
    # BatchNorm running stats seeded from the "mean"/"std" constructor args.
    mean = jax.random.normal(k[4], (F,), jnp.float32) * 0.5
    std = jax.random.uniform(k[5], (F,), jnp.float32, 0.5, 1.5)
    var = std ** 2

    # One-time parameter transform (outside the per-call hot path).
    w1p, aux = fold_and_pack_params(mean, var, w1, b1, w2, b2)

    B = 8  # small demo batch; larger batches shard across the parallel grid axis
    x = jax.random.normal(kx, (B, F), jnp.float32)

    y = features_only_forward(x, w1p, aux)
    y = jax.block_until_ready(y)

    # Pure-JAX reference with the original (un-folded) eval-mode semantics.
    xn_ref = (x - mean) / jnp.sqrt(var + EPS)
    h_ref = jnp.maximum(xn_ref @ w1 + b1, 0.0)
    y_ref = jax.nn.sigmoid(h_ref @ w2 + b2)
    assert y.shape == (B, O)
    assert jnp.allclose(y, y_ref, atol=1e-5, rtol=1e-5)

    print("KERNEL_OK")
</pallas_src>

<mosaic_0001>
module attributes {stable_mosaic.version = 11 : i64} {
  func.func @features_only_kernel(%arg0: i32, %arg1: memref<8x156xf32, #tpu.memory_space<vmem>>, %arg2: memref<156x128xf32, #tpu.memory_space<vmem>>, %arg3: memref<8x128xf32, #tpu.memory_space<vmem>>, %arg4: memref<8x1xf32, #tpu.memory_space<vmem>>) attributes {dimension_semantics = [#tpu.dimension_semantics<parallel>], iteration_bounds = array<i64: 1>, scalar_prefetch = 0 : i64, scratch_operands = 0 : i64, tpu.core_type = #tpu.core_type<tc>, window_params = [{transform_indices = @transform_0, window_bounds = array<i64: 8, 156>}, {pipeline_mode = #tpu.pipeline_mode<synchronous>, transform_indices = @transform_1, window_bounds = array<i64: 156, 128>}, {pipeline_mode = #tpu.pipeline_mode<synchronous>, transform_indices = @transform_2, window_bounds = array<i64: 8, 128>}, {transform_indices = @transform_3, window_bounds = array<i64: 8, 1>}]} {
    %c0 = arith.constant 0 : index
    %c0_0 = arith.constant 0 : index
    %0 = vector.load %arg1[%c0, %c0_0] : memref<8x156xf32, #tpu.memory_space<vmem>>, vector<8x156xf32>
    %c0_1 = arith.constant 0 : index
    %c0_2 = arith.constant 0 : index
    %1 = vector.load %arg2[%c0_1, %c0_2] : memref<156x128xf32, #tpu.memory_space<vmem>>, vector<156x128xf32>
    %cst = arith.constant dense<0.000000e+00> : vector<8x128xf32>
    %2 = tpu.matmul %0, %1, %cst {dimension_numbers = #tpu.dot_dimension_numbers<[1], [0], [0], [1], [0, 0, 1, 1], [], []>} : vector<8x156xf32>, vector<156x128xf32>, vector<8x128xf32> -> vector<8x128xf32>
    %c0_3 = arith.constant 0 : index
    %c0_4 = arith.constant 0 : index
    %3 = vector.load %arg3[%c0_3, %c0_4] : memref<8x128xf32, #tpu.memory_space<vmem>>, vector<1x128xf32>
    %4 = vector.broadcast %3 : vector<1x128xf32> to vector<8x128xf32>
    %5 = arith.addf %2, %4 : vector<8x128xf32>
    %cst_5 = arith.constant 0.000000e+00 : f32
    %6 = vector.broadcast %cst_5 : f32 to vector<8x128xf32>
    %7 = arith.maximumf %5, %6 : vector<8x128xf32>
    %c1 = arith.constant 1 : index
    %c0_6 = arith.constant 0 : index
    %8 = vector.load %arg3[%c1, %c0_6] : memref<8x128xf32, #tpu.memory_space<vmem>>, vector<1x128xf32>
    %9 = vector.broadcast %8 : vector<1x128xf32> to vector<8x128xf32>
    %10 = arith.mulf %7, %9 : vector<8x128xf32>
    %cst_7 = arith.constant dense<0.000000e+00> : vector<8xf32>
    %11 = vector.multi_reduction <add>, %10, %cst_7 [1] : vector<8x128xf32> to vector<8xf32>
    %12 = vector.shape_cast %11 : vector<8xf32> to vector<8x1xf32>
    %c2 = arith.constant 2 : index
    %c0_8 = arith.constant 0 : index
    %13 = vector.load %arg3[%c2, %c0_8] : memref<8x128xf32, #tpu.memory_space<vmem>>, vector<1x1xf32>
    %14 = vector.broadcast %13 : vector<1x1xf32> to vector<8x1xf32>
    %15 = arith.addf %12, %14 : vector<8x1xf32>
    %cst_9 = arith.constant 5.000000e-01 : f32
    %16 = vector.broadcast %cst_9 : f32 to vector<8x1xf32>
    %17 = arith.mulf %16, %15 : vector<8x1xf32>
    %18 = math.tanh %17 : vector<8x1xf32>
    %cst_10 = arith.constant 1.000000e+00 : f32
    %19 = vector.broadcast %cst_10 : f32 to vector<8x1xf32>
    %20 = arith.addf %18, %19 : vector<8x1xf32>
    %cst_11 = arith.constant 5.000000e-01 : f32
    %21 = vector.broadcast %cst_11 : f32 to vector<8x1xf32>
    %22 = arith.mulf %21, %20 : vector<8x1xf32>
    %c0_12 = arith.constant 0 : index
    %c0_13 = arith.constant 0 : index
    %23 = vector.load %arg4[%c0_12, %c0_13] : memref<8x1xf32, #tpu.memory_space<vmem>>, vector<8x1xf32>
    tpu.vector_store %arg4[%c0_12, %c0_13], %22 {strides = array<i32>} : memref<8x1xf32, #tpu.memory_space<vmem>>, vector<8x1xf32>,
    return
  }
  func.func @transform_0(%arg0: i32) -> (i32, i32) {
    %c0_i32 = arith.constant 0 : i32
    %c0_i32_0 = arith.constant 0 : i32
    return %arg0, %c0_i32 : i32, i32
  }
  func.func @transform_1(%arg0: i32) -> (i32, i32) {
    %c0_i32 = arith.constant 0 : i32
    %c0_i32_0 = arith.constant 0 : i32
    %c0_i32_1 = arith.constant 0 : i32
    return %c0_i32, %c0_i32_0 : i32, i32
  }
  func.func @transform_2(%arg0: i32) -> (i32, i32) {
    %c0_i32 = arith.constant 0 : i32
    %c0_i32_0 = arith.constant 0 : i32
    %c0_i32_1 = arith.constant 0 : i32
    return %c0_i32, %c0_i32_0 : i32, i32
  }
  func.func @transform_3(%arg0: i32) -> (i32, i32) {
    %c0_i32 = arith.constant 0 : i32
    %c0_i32_0 = arith.constant 0 : i32
    return %arg0, %c0_i32 : i32, i32
  }
}

</mosaic_0001>

<bundles_post_ra>
// kernel: tpu_custom_call.1
= control target key start
LH: loop header
LB: loop body
LE: loop exit
PB: predicated region body
PF: predicated region fallthrough
CT: control target
= control target key end

     0   :  { %8 = vsyncpa [#allocation3], 0  ;;  %s318_s0 = inlined_call_operand.hbm [shape: f32[8,156], index: 0, kind: input, shape index: {}]   ;;  %s319_s1 = inlined_call_operand.hbm [shape: f32[156,128], index: 1, kind: input, shape index: {}]   ;;  %s320_s2 = inlined_call_operand.hbm [shape: f32[8,128], index: 2, kind: input, shape index: {}]   ;;  %s321_s3 = inlined_call_operand.vmem [shape: f32[8,1], index: 3, kind: output, shape index: {}]  }
   0x1   :  { %9 = vsyncpa [#allocation5], 0  ;;  %s260_s12 = smov [#allocation4]  }
   0x2   :  { %s25_s13 = sshll.u32 %s260_s12, 4  ;;  %s26_s13 = int_to_ptr.vmem [resolvable:$true] %s25_s13 }
   0x3   :  { %s204_s14 = scalar_lea.vmem %s26_s13, 2560  ;;  %p209_p1 = scmp.lt.s32.totalorder %s26_s13, %s26_s13 }
   0x4   :  { %p205_p0 = scmp.ne.s32.totalorder %s26_s13, %s204_s14  ;;  %p210_p2 = scmp.lt.s32.totalorder %s204_s14, %s204_s14 }
   0x6   :  { %p211_p3 = por %p210_p2, %p209_p1 }
   0x8   :  { %p212_p4 = pnand %p211_p3, %p205_p0 }
   0xa   :  { %215 = shalt.err (!%p212_p4)
}
   0xb   :  { %s261_s15 = smov 128   ;;  %s262_s16 = smov 8  }
   0xc   :  { %31 = dma.hbm_to_vmem [thread:$0]  %s319_s1, 2560, %s26_s13, [#allocation5], %s261_s15, %s261_s15, %s262_s16  }
   0xd   :  { %s263_s19 = smov [#allocation2]   ;;  %s264_s21 = smov [#allocation6]  }
   0xe   :  { %s16_s20 = sshll.u32 %s263_s19, 4  ;;  %s38_s22 = sshll.u32 %s264_s21, 4  ;;  %s17_s20 = int_to_ptr.vmem [resolvable:$true] %s16_s20  ;;  %s39_s22 = int_to_ptr.vmem [resolvable:$true] %s38_s22 }
   0xf   :  { %s224_s23 = scalar_lea.vmem %s17_s20, 256  ;;  %p229_p6 = scmp.lt.s32.totalorder %s17_s20, %s17_s20 }
  0x10   :  { %p225_p5 = scmp.ne.s32.totalorder %s17_s20, %s224_s23  ;;  %p230_p7 = scmp.lt.s32.totalorder %s224_s23, %s224_s23 }
  0x12   :  { %p231_p8 = por %p230_p7, %p229_p6 }
  0x14   :  { %p232_p9 = pnand %p231_p8, %p225_p5 }
  0x16   :  { %235 = shalt.err (!%p232_p9)
}
  0x17   :  { %19 = dma.hbm_to_vmem [thread:$0]  %s318_s0, 256, %s17_s20, [#allocation3]  }
  0x18   :  { %s244_s26 = scalar_lea.vmem %s39_s22, 128  ;;  %p249_p11 = scmp.lt.s32.totalorder %s39_s22, %s39_s22 }
  0x19   :  { %p245_p10 = scmp.ne.s32.totalorder %s39_s22, %s244_s26  ;;  %p250_p12 = scmp.lt.s32.totalorder %s244_s26, %s244_s26 }
  0x1b   :  { %p251_p13 = por %p250_p12, %p249_p11 }
  0x1d   :  { %p252_p0 = pnand %p251_p13, %p245_p10 }
  0x1f   :  { %255 = shalt.err (!%p252_p0)
}
  0x20   :  { %41 = dma.hbm_to_vmem [thread:$0]  %s320_s2, 128, %s39_s22, [#allocation5]  }
  0x21   :  { %256 = dma.done.wait [#allocation3], 256  }
  0x22   :  { %257 = vsyncadd [#allocation3], 4294967040 }
  0x23   :  { %258 = dma.done.wait [#allocation5], 2688  }
  0x24   :  { %259 = vsyncadd [#allocation5], 4294964608  ;;  %v265_v0 = vmov 0.0   ;;  %v68_v1 = vld [vmem:[#allocation4 + $0x78] sm:$0xff]  ;;  %v67_v2 = vld [vmem:[#allocation4 + $0x70] sm:$0xff]  ;;  %vm78_vm0 = vcmask 228352  }
  0x25   :  { %86 = vmatprep.subr.mxu0 %v265_v0  ;;  %v66_v3 = vld [vmem:[#allocation4 + $0x68] sm:$0xff]  ;;  %v65_v4 = vld [vmem:[#allocation4 + $0x60] sm:$0xff]  ;;  %v64_v5 = vld [vmem:[#allocation4 + $0x58] sm:$0xff]  ;;  %vm82_vm1 = vcmask 1043456   ;;  %vm175_vm2 = vcmask 7168  }
  0x26   :  { %87 = vmatpush1.msra.mxu0 %v68_v1  ;;  %v52_v6 = vld [vmem:[#allocation2 + $0x8] sm:$0xff]  ;;  %v63_v7 = vld [vmem:[#allocation4 + $0x50] sm:$0xff]  ;;  %v62_v8 = vld [vmem:[#allocation4 + $0x48] sm:$0xff] }
  0x27   :  { %88 = vmatprep.subr.mxu0 %v265_v0  ;;  %185 = vmatprep.mubr.msk.f32.mxu0 %vm78_vm0, %v52_v6  ;;  %v61_v9 = vld [vmem:[#allocation4 + $0x40] sm:$0xff]  ;;  %v60_v10 = vld [vmem:[#allocation4 + $0x38] sm:$0xff]  ;;  %v59_v11 = vld [vmem:[#allocation4 + $0x30] sm:$0xff] }
  0x28   :  { %89 = vmatpush1.msra.mxu0 %v67_v2  ;;  %v58_v12 = vld [vmem:[#allocation4 + $0x28] sm:$0xff]  ;;  %v57_v13 = vld [vmem:[#allocation4 + $0x20] sm:$0xff]  ;;  %v56_v14 = vld [vmem:[#allocation4 + $0x18] sm:$0xff] }
  0x29   :  { %90 = vmatprep.subr.mxu0 %v265_v0  ;;  %v55_v15 = vld [vmem:[#allocation4 + $0x10] sm:$0xff]  ;;  %v54_v16 = vld [vmem:[#allocation4 + $0x8] sm:$0xff]  ;;  %v53_v17 = vld [vmem:[#allocation4] sm:$0xff] }
  0x2a   :  { %91 = vmatpush1.msra.mxu0 %v66_v3  ;;  %v72_v18 = vld [vmem:[#allocation4 + $0x98] sm:$0xf]  ;;  %v71_v19 = vld [vmem:[#allocation4 + $0x90] sm:$0xff]  ;;  %v70_v20 = vld [vmem:[#allocation4 + $0x88] sm:$0xff] }
  0x2b   :  { %92 = vmatprep.subr.mxu0 %v265_v0  ;;  %v69_v21 = vld [vmem:[#allocation4 + $0x80] sm:$0xff]  ;;  %v51_v22 = vld [vmem:[#allocation2] sm:$0xff] }
  0x2c   :  { %93 = vmatpush1.msra.mxu0 %v65_v4  ;;  %v183_v23 = vld [vmem:[#allocation6] ss:$0 sm:$0xff]  ;;  %v186_v27 = vld [vmem:[#allocation6 + $0x1] ss:$0 sm:$0xff]  ;;  %v187_v30 = vld [vmem:[#allocation6 + $0x2] ss:$0 sm:$0xff] }
  0x2d   :  { %94 = vmatprep.subr.mxu0 %v265_v0 }
  0x2e   :  { %95 = vmatpush1.msra.mxu0 %v64_v5 }
  0x2f   :  { %96 = vmatprep.subr.mxu0 %v265_v0 }
  0x30   :  { %97 = vmatpush1.msra.mxu0 %v63_v7 }
  0x31   :  { %98 = vmatprep.subr.mxu0 %v265_v0 }
  0x32   :  { %99 = vmatpush1.msra.mxu0 %v62_v8 }
  0x33   :  { %100 = vmatprep.subr.mxu0 %v265_v0 }
  0x34   :  { %101 = vmatpush1.msra.mxu0 %v61_v9 }
  0x35   :  { %102 = vmatprep.subr.mxu0 %v265_v0 }
  0x36   :  { %103 = vmatpush1.msra.mxu0 %v60_v10 }
  0x37   :  { %104 = vmatprep.subr.mxu0 %v265_v0 }
  0x38   :  { %105 = vmatpush1.msra.mxu0 %v59_v11 }
  0x39   :  { %106 = vmatprep.subr.mxu0 %v265_v0 }
  0x3a   :  { %107 = vmatpush1.msra.mxu0 %v58_v12 }
  0x3b   :  { %108 = vmatprep.subr.mxu0 %v265_v0 }
  0x3c   :  { %109 = vmatpush1.msra.mxu0 %v57_v13 }
  0x3d   :  { %110 = vmatprep.subr.mxu0 %v265_v0 }
  0x3e   :  { %111 = vmatpush1.msra.mxu0 %v56_v14 }
  0x3f   :  { %112 = vmatprep.subr.mxu0 %v265_v0 }
  0x40   :  { %113 = vmatpush1.msra.mxu0 %v55_v15 }
  0x41   :  { %114 = vmatprep.subr.mxu0 %v265_v0 }
  0x42   :  { %115 = vmatpush1.msra.mxu0 %v54_v16 }
  0x43   :  { %116 = vmatprep.subr.mxu0 %v265_v0 }
  0x44   :  { %117 = vmatpush1.msra.mxu0 %v53_v17 }
  0x45   :  { %142 = vmatprep.subr.mxu0 %v265_v0 }
  0x46   :  { %184 = vmatpush2.msk.msra.mxu0 %vm82_vm1, %v72_v18 }
  0x47   :  { %144 = vmatprep.subr.mxu0 %v265_v0 }
  0x48   :  { %145 = vmatpush2.msra.mxu0 %v71_v19 }
  0x49   :  { %146 = vmatprep.subr.mxu0 %v265_v0 }
  0x4a   :  { %147 = vmatpush2.msra.mxu0 %v70_v20 }
  0x4b   :  { %148 = vmatprep.subr.mxu0 %v265_v0 }
  0x4c   :  { %149 = vmatpush2.msra.mxu0 %v69_v21 }
  0x4d   :  { %151 = vmatmul.mubr.f32.vlgmr.msra.gmra.mxu0 %v51_v22 }
 0x10d   :  { %v152_v24 = vpop.f32.mrf.mxu0 }
 0x10e   :  { %v153_v25 = vadd.f32 %v183_v23, %v152_v24 }
 0x10f   :  { %v154_v26 = vpop.f32.mrf.mxu0 }
 0x110   :  { %v156_v28 = vmax.f32 %v153_v25, 0.0 }
 0x112   :  { %v162_v29 = vmul.f32 %v186_v27, %v156_v28 }
 0x114   :  { %163 = vadd.xlane.f32.xlu0 %v162_v29 }
 0x19d   :  { %v164_v31 = vpop.xlane.xlu0 %163 }
 0x19e   :  { %v170_v32 = vadd.f32 %v187_v30, %v164_v31 }
 0x1a0   :  { %v171_v33 = vmul.f32 0.5, %v170_v32 }
 0x1a2   :  { %194 = vtanh.f32 %v171_v33 }
 0x1af   :  { %v195_v34 = vpop.eup %194 }
 0x1b0   :  { %v173_v35 = vadd.f32 1.0, %v195_v34 }
 0x1b2   :  { %v174_v36 = vmul.f32 0.5, %v173_v35 }
 0x1b4   :  { %176 = vst.msk [vmem:[%s321_s3] sm:$0xff] %vm175_vm2, %v174_v36 }
 0x1b5   :  { %181 = vsyncpa [#allocation3], 1 }
 0x1b6   :  { %182 = vsyncpa [#allocation5], 1 }

</bundles_post_ra>
